<compile_context>
chip_gen: v7x
topology: tpu7x:2x2x1
jax: 0.10.0
libtpu: 0.0.40
codegen_flags: <defaults>
</compile_context>

<pallas_src>
import functools

import jax
import jax.numpy as jnp
from jax.experimental import pallas as pl
from jax.experimental.pallas import tpu as pltpu


def _round_up(x, m):
    return ((x + m - 1) // m) * m


def _pcnn_kernel(x_ref, w_ref, b_ref, idx1_ref, idx2_ref, out_ref, *,
                 bag, l_pad, h_out, n_taps):
    # x_ref:    VMEM (bag*l_pad + tail, D_pad) f32   flattened, per-bag row blocks
    # w_ref:    VMEM (K, D_pad, C_pad)         bf16  per-tap weight slabs (D_pad x C_pad)
    # b_ref:    VMEM (1, C_pad)                f32
    # idx1_ref: VMEM (bag, 1, 1)               int32 (entity_pos[:,0] + K//2)
    # idx2_ref: VMEM (bag, 1, 1)               int32 (entity_pos[:,1] + K//2)
    # out_ref:  VMEM (3, bag, C_pad)           f32   pool1 / pool2 / pool3 rows
    r_out = bag * l_pad
    c_pad = out_ref.shape[-1]

    # --- conv as K accumulated matmuls: bf16 operands on the MXU, f32 accumulate ---
    # Row r = b*l_pad + h of `acc` is the conv output at sequence position h of bag b
    # (valid for h < h_out; rows h >= h_out are masked out of the pooling below).
    lhs = x_ref[0:r_out, :].astype(jnp.bfloat16)
    acc = jnp.dot(lhs, w_ref[0], preferred_element_type=jnp.float32)
    for kh in range(1, n_taps):                       # K is small & static -> unrolled
        lhs = x_ref[kh:kh + r_out, :].astype(jnp.bfloat16)
        acc = acc + jnp.dot(lhs, w_ref[kh], preferred_element_type=jnp.float32)

    act = jnp.tanh(acc + b_ref[...])                  # (r_out, C_pad) f32  (EUP tanh)
    act3 = act.reshape(bag, l_pad, c_pad)             # layout-preserving split

    # --- piecewise max-pool over the sequence, vectorized across all bags ---
    h = jax.lax.broadcasted_iota(jnp.int32, (bag, l_pad, 1), 1)
    lt1 = h < idx1_ref[...]                           # h <  idx1
    lt2 = h < idx2_ref[...]                           # h <  idx2
    valid = h < h_out                                 # drop padded / invalid rows
    neg = jnp.float32(-jnp.inf)

    out_ref[0, :, :] = jnp.max(jnp.where(lt1 & valid, act3, neg), axis=1)
    out_ref[1, :, :] = jnp.max(jnp.where((~lt1) & lt2 & valid, act3, neg), axis=1)
    out_ref[2, :, :] = jnp.max(jnp.where((~lt2) & valid, act3, neg), axis=1)


def pcnn_forward(inputs, entity_pos, weight, bias, *, window_size, padding):
    """Forward of PCNN (eval mode: dropout is identity).

    inputs:     (bag, 1, seq_len, D) float32
    entity_pos: (bag, 2) int
    weight:     (C, 1, K, D) float32   (Conv2d weight, OIHW; kernel spans full width D)
    bias:       (C,) float32
    returns:    (bag, C, 3) float32    (matches PyTorch output; W_out == 1)
    """
    bag, _, seq_len, D = inputs.shape
    C = weight.shape[0]
    K = window_size
    assert weight.shape == (C, 1, K, D)
    half = K // 2

    # lane-dense padded dims
    D_pad = _round_up(D, 128)
    C_pad = _round_up(C, 128)
    L = seq_len + 2 * padding                 # conv-padded sequence length
    h_out = L - K + 1                         # number of conv output positions
    L_pad = _round_up(L, 8)                   # per-bag row-block length (sublane aligned)
    R_out = bag * L_pad
    tail = _round_up(max(K - 1, 1), 8)        # zero rows so tap slices stay in-bounds
    R_in = R_out + tail

    # --- glue: single (non-duplicated) padded copy of the input, flattened to 2-D ---
    x = inputs[:, 0]                                                   # (bag, S, D)
    x = jnp.pad(x, ((0, 0),
                    (padding, L_pad - seq_len - padding),              # conv + align pad
                    (0, D_pad - D))).astype(jnp.float32)               # (bag, L_pad, D_pad)
    x_flat = x.reshape(R_out, D_pad)
    x_flat = jnp.pad(x_flat, ((0, tail), (0, 0)))                      # (R_in, D_pad)
    # NOTE: input kept f32 in HBM (cast to bf16 in-kernel right before the MXU); at
    # very large seq/D it could be stored bf16 to halve HBM bytes as well.

    # per-tap weight slabs: w_kdc[kh, d, c] = weight[c, 0, kh, d]
    w_kdc = jnp.transpose(weight[:, 0], (1, 2, 0))                     # (K, D, C)
    w_kdc = jnp.pad(w_kdc, ((0, 0), (0, D_pad - D), (0, C_pad - C)))
    w_kdc = w_kdc.astype(jnp.bfloat16)                                 # (K, D_pad, C_pad)

    b_row = jnp.pad(bias, (0, C_pad - C)).reshape(1, C_pad).astype(jnp.float32)

    pos = entity_pos.astype(jnp.int32) + half
    idx1 = pos[:, 0].reshape(bag, 1, 1)
    idx2 = pos[:, 1].reshape(bag, 1, 1)

    kernel = functools.partial(_pcnn_kernel, bag=bag, l_pad=L_pad,
                               h_out=h_out, n_taps=K)

    out = pl.pallas_call(
        kernel,
        out_shape=jax.ShapeDtypeStruct((3, bag, C_pad), jnp.float32),
        grid=(1,),
        in_specs=[
            pl.BlockSpec((R_in, D_pad), lambda i: (0, 0)),
            pl.BlockSpec((K, D_pad, C_pad), lambda i: (0, 0, 0)),
            pl.BlockSpec((1, C_pad), lambda i: (0, 0)),
            pl.BlockSpec((bag, 1, 1), lambda i: (0, 0, 0)),
            pl.BlockSpec((bag, 1, 1), lambda i: (0, 0, 0)),
        ],
        out_specs=pl.BlockSpec((3, bag, C_pad), lambda i: (0, 0, 0)),
        compiler_params=pltpu.CompilerParams(
            dimension_semantics=("parallel",)),
    )(x_flat, w_kdc, b_row, idx1, idx2)

    # TODO(synk): nn.Dropout(p=0.5) in training mode (random mask + 1/(1-p) scaling)
    # is not reproduced; forward here corresponds to eval mode (identity).
    return jnp.transpose(out[:, :, :C], (1, 2, 0))     # (bag, C, 3)


def pcnn_reference(inputs, entity_pos, weight, bias, *, window_size, padding):
    """Pure-JAX f32 reference replicating the PyTorch forward (eval mode)."""
    conv = jax.lax.conv_general_dilated(
        inputs, weight,
        window_strides=(1, 1),
        padding=((padding, padding), (0, 0)),
        dimension_numbers=("NCHW", "OIHW", "NCHW"),
    ) + bias.reshape(1, -1, 1, 1)
    act = jnp.tanh(conv)  # (bag, C, h_out, 1)
    half = window_size // 2
    outs = []
    for i in range(inputs.shape[0]):
        idx1 = int(entity_pos[i, 0]) + half
        idx2 = int(entity_pos[i, 1]) + half
        p1 = act[i, :, :idx1, :].max(axis=1)
        p2 = act[i, :, idx1:idx2, :].max(axis=1)
        p3 = act[i, :, idx2:, :].max(axis=1)
        outs.append(jnp.concatenate([p1, p2, p3], axis=1)[None])
    return jnp.concatenate(outs, axis=0)  # (bag, C, 3)


if __name__ == "__main__":
    # Small shapes consistent with the module:
    #   bag_size=2, in_channels=1, seq_len=16, word_dim=24, position_dim=4 -> D=32
    #   out_channels=32, kernel_size=(3, 32), padding=(1, 0)
    bag, seq_len, word_dim, pos_dim = 2, 16, 24, 4
    D = word_dim + 2 * pos_dim
    C = 32
    K = 3
    padding = 1

    key = jax.random.PRNGKey(0)
    k_x, k_w, k_b = jax.random.split(key, 3)

    inputs = jax.random.normal(k_x, (bag, 1, seq_len, D), dtype=jnp.float32)
    entity_pos = jnp.array([[3, 9], [5, 12]], dtype=jnp.int32)  # (bag, 2)
    weight = jax.random.normal(k_w, (C, 1, K, D), dtype=jnp.float32) * 0.1
    bias = jax.random.normal(k_b, (C,), dtype=jnp.float32) * 0.1

    out = pcnn_forward(inputs, entity_pos, weight, bias,
                       window_size=K, padding=padding)
    out = jax.block_until_ready(out)

    ref = pcnn_reference(inputs, entity_pos, weight, bias,
                         window_size=K, padding=padding)
    assert out.shape == (bag, C, 3), out.shape
    max_err = jnp.max(jnp.abs(out - ref))
    # bf16 MXU operands (f32 accumulate) -> relaxed tolerance vs the f32 reference.
    assert jnp.allclose(out, ref, atol=2e-2, rtol=2e-2), f"max abs err = {max_err}"

    print("KERNEL_OK")
</pallas_src>

<mosaic_0001>
module attributes {stable_mosaic.version = 11 : i64} {
  func.func @_pcnn_kernel(%arg0: i32, %arg1: memref<56x128xf32, #tpu.memory_space<vmem>>, %arg2: memref<3x128x128xbf16, #tpu.memory_space<vmem>>, %arg3: memref<1x128xf32, #tpu.memory_space<vmem>>, %arg4: memref<2x1x1xi32, #tpu.memory_space<vmem>>, %arg5: memref<2x1x1xi32, #tpu.memory_space<vmem>>, %arg6: memref<3x2x128xf32, #tpu.memory_space<vmem>>) attributes {dimension_semantics = [#tpu.dimension_semantics<parallel>], iteration_bounds = array<i64: 1>, scalar_prefetch = 0 : i64, scratch_operands = 0 : i64, tpu.core_type = #tpu.core_type<tc>, window_params = [{pipeline_mode = #tpu.pipeline_mode<synchronous>, transform_indices = @transform_0, window_bounds = array<i64: 56, 128>}, {pipeline_mode = #tpu.pipeline_mode<synchronous>, transform_indices = @transform_1, window_bounds = array<i64: 3, 128, 128>}, {pipeline_mode = #tpu.pipeline_mode<synchronous>, transform_indices = @transform_2, window_bounds = array<i64: 1, 128>}, {pipeline_mode = #tpu.pipeline_mode<synchronous>, transform_indices = @transform_3, window_bounds = array<i64: 2, 1, 1>}, {pipeline_mode = #tpu.pipeline_mode<synchronous>, transform_indices = @transform_4, window_bounds = array<i64: 2, 1, 1>}, {pipeline_mode = #tpu.pipeline_mode<synchronous>, transform_indices = @transform_5, window_bounds = array<i64: 3, 2, 128>}]} {
    %c0 = arith.constant 0 : index
    %c0_0 = arith.constant 0 : index
    %0 = vector.load %arg1[%c0, %c0_0] : memref<56x128xf32, #tpu.memory_space<vmem>>, vector<48x128xf32>
    %1 = arith.truncf %0 : vector<48x128xf32> to vector<48x128xbf16>
    %c0_1 = arith.constant 0 : index
    %c0_2 = arith.constant 0 : index
    %c0_3 = arith.constant 0 : index
    %2 = vector.load %arg2[%c0_1, %c0_2, %c0_3] : memref<3x128x128xbf16, #tpu.memory_space<vmem>>, vector<1x128x128xbf16>
    %3 = vector.shape_cast %2 : vector<1x128x128xbf16> to vector<128x128xbf16>
    %cst = arith.constant dense<0.000000e+00> : vector<48x128xf32>
    %4 = tpu.matmul %1, %3, %cst {dimension_numbers = #tpu.dot_dimension_numbers<[1], [0], [0], [1], [0, 0, 1, 1], [], []>} : vector<48x128xbf16>, vector<128x128xbf16>, vector<48x128xf32> -> vector<48x128xf32>
    %c1 = arith.constant 1 : index
    %c0_4 = arith.constant 0 : index
    %5 = vector.load %arg1[%c1, %c0_4] : memref<56x128xf32, #tpu.memory_space<vmem>>, vector<48x128xf32>
    %6 = arith.truncf %5 : vector<48x128xf32> to vector<48x128xbf16>
    %c1_5 = arith.constant 1 : index
    %c0_6 = arith.constant 0 : index
    %c0_7 = arith.constant 0 : index
    %7 = vector.load %arg2[%c1_5, %c0_6, %c0_7] : memref<3x128x128xbf16, #tpu.memory_space<vmem>>, vector<1x128x128xbf16>
    %8 = vector.shape_cast %7 : vector<1x128x128xbf16> to vector<128x128xbf16>
    %cst_8 = arith.constant dense<0.000000e+00> : vector<48x128xf32>
    %9 = tpu.matmul %6, %8, %cst_8 {dimension_numbers = #tpu.dot_dimension_numbers<[1], [0], [0], [1], [0, 0, 1, 1], [], []>} : vector<48x128xbf16>, vector<128x128xbf16>, vector<48x128xf32> -> vector<48x128xf32>
    %10 = arith.addf %4, %9 : vector<48x128xf32>
    %c2 = arith.constant 2 : index
    %c0_9 = arith.constant 0 : index
    %11 = vector.load %arg1[%c2, %c0_9] : memref<56x128xf32, #tpu.memory_space<vmem>>, vector<48x128xf32>
    %12 = arith.truncf %11 : vector<48x128xf32> to vector<48x128xbf16>
    %c2_10 = arith.constant 2 : index
    %c0_11 = arith.constant 0 : index
    %c0_12 = arith.constant 0 : index
    %13 = vector.load %arg2[%c2_10, %c0_11, %c0_12] : memref<3x128x128xbf16, #tpu.memory_space<vmem>>, vector<1x128x128xbf16>
    %14 = vector.shape_cast %13 : vector<1x128x128xbf16> to vector<128x128xbf16>
    %cst_13 = arith.constant dense<0.000000e+00> : vector<48x128xf32>
    %15 = tpu.matmul %12, %14, %cst_13 {dimension_numbers = #tpu.dot_dimension_numbers<[1], [0], [0], [1], [0, 0, 1, 1], [], []>} : vector<48x128xbf16>, vector<128x128xbf16>, vector<48x128xf32> -> vector<48x128xf32>
    %16 = arith.addf %10, %15 : vector<48x128xf32>
    %c0_14 = arith.constant 0 : index
    %c0_15 = arith.constant 0 : index
    %17 = vector.load %arg3[%c0_14, %c0_15] : memref<1x128xf32, #tpu.memory_space<vmem>>, vector<1x128xf32>
    %18 = vector.broadcast %17 : vector<1x128xf32> to vector<48x128xf32>
    %19 = arith.addf %16, %18 : vector<48x128xf32>
    %20 = math.tanh %19 : vector<48x128xf32>
    %21 = vector.shape_cast %20 : vector<48x128xf32> to vector<2x24x128xf32>
    %22 = tpu.iota {dimensions = array<i32: 1>} : vector<2x24x1xi32>
    %c0_16 = arith.constant 0 : index
    %c0_17 = arith.constant 0 : index
    %c0_18 = arith.constant 0 : index
    %23 = vector.load %arg4[%c0_16, %c0_17, %c0_18] : memref<2x1x1xi32, #tpu.memory_space<vmem>>, vector<2x1x1xi32>
    %24 = vector.broadcast %23 : vector<2x1x1xi32> to vector<2x24x1xi32>
    %25 = arith.cmpi slt, %22, %24 : vector<2x24x1xi32>
    %c0_19 = arith.constant 0 : index
    %c0_20 = arith.constant 0 : index
    %c0_21 = arith.constant 0 : index
    %26 = vector.load %arg5[%c0_19, %c0_20, %c0_21] : memref<2x1x1xi32, #tpu.memory_space<vmem>>, vector<2x1x1xi32>
    %27 = vector.broadcast %26 : vector<2x1x1xi32> to vector<2x24x1xi32>
    %28 = arith.cmpi slt, %22, %27 : vector<2x24x1xi32>
    %c16_i32 = arith.constant 16 : i32
    %29 = vector.broadcast %c16_i32 : i32 to vector<2x24x1xi32>
    %30 = arith.cmpi slt, %22, %29 : vector<2x24x1xi32>
    %31 = arith.andi %25, %30 : vector<2x24x1xi1>
    %cst_22 = arith.constant 0xFF800000 : f32
    %32 = vector.shape_cast %31 : vector<2x24x1xi1> to vector<2x24x1xi1>
    %33 = vector.broadcast %32 : vector<2x24x1xi1> to vector<2x24x128xi1>
    %34 = vector.broadcast %cst_22 : f32 to vector<2x24x128xf32>
    %35 = arith.select %33, %21, %34 : vector<2x24x128xi1>, vector<2x24x128xf32>
    %cst_23 = arith.constant dense<0xFF800000> : vector<2x128xf32>
    %36 = vector.multi_reduction <maximumf>, %35, %cst_23 [1] : vector<2x24x128xf32> to vector<2x128xf32>
    %c0_24 = arith.constant 0 : index
    %c0_25 = arith.constant 0 : index
    %c0_26 = arith.constant 0 : index
    %37 = vector.load %arg6[%c0_24, %c0_25, %c0_26] : memref<3x2x128xf32, #tpu.memory_space<vmem>>, vector<1x2x128xf32>
    %38 = vector.shape_cast %37 : vector<1x2x128xf32> to vector<2x128xf32>
    %39 = vector.shape_cast %36 : vector<2x128xf32> to vector<1x2x128xf32>
    tpu.vector_store %arg6[%c0_24, %c0_25, %c0_26], %39 {strides = array<i32>} : memref<3x2x128xf32, #tpu.memory_space<vmem>>, vector<1x2x128xf32>,
    %cst_27 = arith.constant dense<true> : vector<2x24x1xi1>
    %40 = arith.xori %25, %cst_27 : vector<2x24x1xi1>
    %41 = arith.andi %40, %28 : vector<2x24x1xi1>
    %42 = arith.andi %41, %30 : vector<2x24x1xi1>
    %cst_28 = arith.constant 0xFF800000 : f32
    %43 = vector.shape_cast %42 : vector<2x24x1xi1> to vector<2x24x1xi1>
    %44 = vector.broadcast %43 : vector<2x24x1xi1> to vector<2x24x128xi1>
    %45 = vector.broadcast %cst_28 : f32 to vector<2x24x128xf32>
    %46 = arith.select %44, %21, %45 : vector<2x24x128xi1>, vector<2x24x128xf32>
    %cst_29 = arith.constant dense<0xFF800000> : vector<2x128xf32>
    %47 = vector.multi_reduction <maximumf>, %46, %cst_29 [1] : vector<2x24x128xf32> to vector<2x128xf32>
    %c1_30 = arith.constant 1 : index
    %c0_31 = arith.constant 0 : index
    %c0_32 = arith.constant 0 : index
    %48 = vector.load %arg6[%c1_30, %c0_31, %c0_32] : memref<3x2x128xf32, #tpu.memory_space<vmem>>, vector<1x2x128xf32>
    %49 = vector.shape_cast %48 : vector<1x2x128xf32> to vector<2x128xf32>
    %50 = vector.shape_cast %47 : vector<2x128xf32> to vector<1x2x128xf32>
    tpu.vector_store %arg6[%c1_30, %c0_31, %c0_32], %50 {strides = array<i32>} : memref<3x2x128xf32, #tpu.memory_space<vmem>>, vector<1x2x128xf32>,
    %cst_33 = arith.constant dense<true> : vector<2x24x1xi1>
    %51 = arith.xori %28, %cst_33 : vector<2x24x1xi1>
    %52 = arith.andi %51, %30 : vector<2x24x1xi1>
    %cst_34 = arith.constant 0xFF800000 : f32
    %53 = vector.shape_cast %52 : vector<2x24x1xi1> to vector<2x24x1xi1>
    %54 = vector.broadcast %53 : vector<2x24x1xi1> to vector<2x24x128xi1>
    %55 = vector.broadcast %cst_34 : f32 to vector<2x24x128xf32>
    %56 = arith.select %54, %21, %55 : vector<2x24x128xi1>, vector<2x24x128xf32>
    %cst_35 = arith.constant dense<0xFF800000> : vector<2x128xf32>
    %57 = vector.multi_reduction <maximumf>, %56, %cst_35 [1] : vector<2x24x128xf32> to vector<2x128xf32>
    %c2_36 = arith.constant 2 : index
    %c0_37 = arith.constant 0 : index
    %c0_38 = arith.constant 0 : index
    %58 = vector.load %arg6[%c2_36, %c0_37, %c0_38] : memref<3x2x128xf32, #tpu.memory_space<vmem>>, vector<1x2x128xf32>
    %59 = vector.shape_cast %58 : vector<1x2x128xf32> to vector<2x128xf32>
    %60 = vector.shape_cast %57 : vector<2x128xf32> to vector<1x2x128xf32>
    tpu.vector_store %arg6[%c2_36, %c0_37, %c0_38], %60 {strides = array<i32>} : memref<3x2x128xf32, #tpu.memory_space<vmem>>, vector<1x2x128xf32>,
    return
  }
  func.func @transform_0(%arg0: i32) -> (i32, i32) {
    %c0_i32 = arith.constant 0 : i32
    %c0_i32_0 = arith.constant 0 : i32
    %c0_i32_1 = arith.constant 0 : i32
    return %c0_i32, %c0_i32_0 : i32, i32
  }
  func.func @transform_1(%arg0: i32) -> (i32, i32, i32) {
    %c0_i32 = arith.constant 0 : i32
    %c0_i32_0 = arith.constant 0 : i32
    %c0_i32_1 = arith.constant 0 : i32
    %c0_i32_2 = arith.constant 0 : i32
    return %c0_i32, %c0_i32_0, %c0_i32_1 : i32, i32, i32
  }
  func.func @transform_2(%arg0: i32) -> (i32, i32) {
    %c0_i32 = arith.constant 0 : i32
    %c0_i32_0 = arith.constant 0 : i32
    %c0_i32_1 = arith.constant 0 : i32
    return %c0_i32, %c0_i32_0 : i32, i32
  }
  func.func @transform_3(%arg0: i32) -> (i32, i32, i32) {
    %c0_i32 = arith.constant 0 : i32
    %c0_i32_0 = arith.constant 0 : i32
    %c0_i32_1 = arith.constant 0 : i32
    %c0_i32_2 = arith.constant 0 : i32
    return %c0_i32, %c0_i32_0, %c0_i32_1 : i32, i32, i32
  }
  func.func @transform_4(%arg0: i32) -> (i32, i32, i32) {
    %c0_i32 = arith.constant 0 : i32
    %c0_i32_0 = arith.constant 0 : i32
    %c0_i32_1 = arith.constant 0 : i32
    %c0_i32_2 = arith.constant 0 : i32
    return %c0_i32, %c0_i32_0, %c0_i32_1 : i32, i32, i32
  }
  func.func @transform_5(%arg0: i32) -> (i32, i32, i32) {
    %c0_i32 = arith.constant 0 : i32
    %c0_i32_0 = arith.constant 0 : i32
    %c0_i32_1 = arith.constant 0 : i32
    %c0_i32_2 = arith.constant 0 : i32
    return %c0_i32, %c0_i32_0, %c0_i32_1 : i32, i32, i32
  }
}

</mosaic_0001>

<bundles_post_ra>
// kernel: tpu_custom_call.1
= control target key start
LH: loop header
LB: loop body
LE: loop exit
PB: predicated region body
PF: predicated region fallthrough
CT: control target
= control target key end

     0   :  { %10 = vsyncpa [#allocation3], 0  ;;  %s1315_s0 = inlined_call_operand.hbm [shape: f32[56,128], index: 0, kind: input, shape index: {}]   ;;  %s1316_s1 = inlined_call_operand.hbm [shape: bf16[3,128,128], index: 1, kind: input, shape index: {}]   ;;  %s1317_s2 = inlined_call_operand.vmem [shape: f32[1,128], index: 2, kind: input, shape index: {}]   ;;  %s1318_s3 = inlined_call_operand.vmem [shape: s32[2,1,1], index: 3, kind: input, shape index: {}]   ;;  %s1319_s4 = inlined_call_operand.vmem [shape: s32[2,1,1], index: 4, kind: input, shape index: {}]   ;;  %s1320_s5 = inlined_call_operand.hbm [shape: f32[3,2,128], index: 5, kind: output, shape index: {}]  }
   0x1   :  { %11 = vsyncpa [#allocation6], 0 }
   0x2   :  { %12 = vsyncpa [#allocation4], 0  ;;  %s1034_s18 = smov [#allocation2]   ;;  %s962_s22 = scalar_lea.hbm %s1315_s0, 896 }
   0x3   :  { %s18_s19 = sshll.u32 %s1034_s18, 4  ;;  %p963_p0 = scmp.ne.s32.totalorder %s1315_s0, %s962_s22  ;;  %s19_s19 = int_to_ptr.vmem [resolvable:$true] %s18_s19 }
   0x4   :  { %p966_p1 = scmp.lt.u32.totalorder %s962_s22, %s1315_s0 }
   0x6   :  { %p968_p2 = pnand %p966_p1, %p963_p0 }
   0x8   :  { %971 = shalt.err (!%p968_p2)
}
   0x9   :  { %s972_s27 = scalar_lea.vmem %s19_s19, 896  ;;  %p977_p4 = scmp.lt.s32.totalorder %s19_s19, %s19_s19 }
   0xa   :  { %p973_p3 = scmp.ne.s32.totalorder %s19_s19, %s972_s27  ;;  %p978_p5 = scmp.lt.s32.totalorder %s972_s27, %s972_s27 }
   0xc   :  { %p979_p6 = por %p978_p5, %p977_p4 }
   0xe   :  { %p980_p7 = pnand %p979_p6, %p973_p3 }
  0x10   :  { %983 = shalt.err (!%p980_p7)
}
  0x11   :  { %s1035_s28 = smov 128   ;;  %s1036_s29 = smov 8  }
  0x12   :  { %24 = dma.hbm_to_vmem [thread:$0]  %s1315_s0, 896, %s19_s19, [#allocation3], %s1035_s28, %s1035_s28, %s1036_s29  }
  0x13   :  { %s1037_s7 = smov [#allocation5]   ;;  %s984_s11 = scalar_lea.hbm %s1316_s1, 3072 }
  0x14   :  { %s30_s8 = sshll.u32 %s1037_s7, 4  ;;  %p985_p8 = scmp.ne.s32.totalorder %s1316_s1, %s984_s11  ;;  %s31_s8 = int_to_ptr.vmem [resolvable:$true] %s30_s8 }
  0x15   :  { %p988_p9 = scmp.lt.u32.totalorder %s984_s11, %s1316_s1 }
  0x17   :  { %p990_p10 = pnand %p988_p9, %p985_p8 }
  0x19   :  { %993 = shalt.err (!%p990_p10)
}
  0x1a   :  { %s994_s16 = scalar_lea.vmem %s31_s8, 3072  ;;  %p999_p12 = scmp.lt.s32.totalorder %s31_s8, %s31_s8 }
  0x1b   :  { %p995_p11 = scmp.ne.s32.totalorder %s31_s8, %s994_s16  ;;  %p1000_p13 = scmp.lt.s32.totalorder %s994_s16, %s994_s16 }
  0x1d   :  { %p1001_p0 = por %p1000_p13, %p999_p12 }
  0x1f   :  { %p1002_p1 = pnand %p1001_p0, %p995_p11 }
  0x21   :  { %1005 = shalt.err (!%p1002_p1)
}
  0x22   :  { %s1038_s0 = smov 64   ;;  %s1039_s17 = smov 4  }
  0x23   :  { %36 = dma.hbm_to_vmem [thread:$0]  %s1316_s1, 3072, %s31_s8, [#allocation6], %s1038_s0, %s1038_s0, %s1039_s17  }
  0x24   :  { %1028 = dma.done.wait [#allocation3], 896  }
  0x25   :  { %1029 = vsyncadd [#allocation3], 4294966400 }
  0x26   :  { %1030 = dma.done.wait [#allocation6], 3072  }
  0x27   :  { %1031 = vsyncadd [#allocation6], 4294964224  ;;  %v1040_v0 = vmov 0.0   ;;  %vm1041_vm0 = vmmov 0   ;;  %v1042_v1 = vmov 0   ;;  %v926_v2 = vld [vmem:[#allocation5 + $0x40] sm:$0xff]   ;;  %v467_v16 = vlaneseq }
  0x28   :  { %796 = vmatprep.subr.bf16.mxu0 %v1040_v0  ;;  %824 = vmatprep.subr.bf16.mxu1 %v1040_v0  ;;  %v927_v3 = vld [vmem:[#allocation5] sm:$0xff]   ;;  %v928_v4 = vld [vmem:[#allocation5 + $0x48] sm:$0xff]   ;;  %v930_v6 = vld [vmem:[#allocation5 + $0x50] sm:$0xff]   ;;  %vm1043_vm4 = vmmov 1  }
  0x29   :  { %812 = vmatprep.mubr.msk.bf16.mxu0 %vm1041_vm0, %v1040_v0  ;;  %840 = vmatprep.mubr.msk.bf16.mxu1 %vm1041_vm0, %v1040_v0  ;;  %v929_v5 = vld [vmem:[#allocation5 + $0x8] sm:$0xff]   ;;  %v931_v7 = vld [vmem:[#allocation5 + $0x10] sm:$0xff]   ;;  %v932_v8 = vld [vmem:[#allocation5 + $0x58] sm:$0xff]   ;;  %v468_v23 = vshrl.u32 %v467_v16, 7 }
  0x2a   :  { %909 = vset.pattern.permute.xlu0 %v1042_v1  ;;  %920 = vset.pattern.permute.xlu1 %v1042_v1  ;;  %v933_v9 = vld [vmem:[#allocation5 + $0x18] sm:$0xff]   ;;  %v934_v10 = vld [vmem:[#allocation5 + $0x60] sm:$0xff]   ;;  %v936_v12 = vld [vmem:[#allocation5 + $0x68] sm:$0xff]  }
  0x2b   :  { %911 = vperm.xlu0 %909, %v1042_v1   ;;  %797 = vmatpush3.bf16.msra.mxu0 %v926_v2  ;;  %v935_v11 = vld [vmem:[#allocation5 + $0x20] sm:$0xff]   ;;  %v937_v13 = vld [vmem:[#allocation5 + $0x28] sm:$0xff]   ;;  %v938_v14 = vld [vmem:[#allocation5 + $0x70] sm:$0xff]   ;;  %v469_v50 = vadd.s32 8, %v468_v23 }
  0x2c   :  { %825 = vmatpush3.bf16.msra.mxu1 %v927_v3  ;;  %798 = vmatprep.subr.bf16.mxu0 %v1040_v0  ;;  %v939_v15 = vld [vmem:[#allocation5 + $0x30] sm:$0xff]   ;;  %v940_v17 = vld [vmem:[#allocation5 + $0x78] sm:$0xff]   ;;  %v50_v21 = vld [vmem:[#allocation2] sm:$0xff] }
  0x2d   :  { %826 = vmatprep.subr.bf16.mxu1 %v1040_v0  ;;  %v941_v18 = vld [vmem:[#allocation5 + $0x38] sm:$0xff]   ;;  %v75_v19 = vld [vmem:[#allocation2 + $0x1] sm:$0xff]  ;;  %v942_v25 = vld [vmem:[#allocation5 + $0x80] sm:$0xff]  }
  0x2e   :  { %v76_v20 = vld [vmem:[#allocation2 + $0x9] sm:$0xff]  ;;  %v1128_v27 = vld [vmem:[%s1318_s3 + $0x1] ss:$0 sm:$0xff]  ;;  %v1133_v28 = vld [vmem:[%s1318_s3] ss:$0 sm:$0xff] }
  0x2f   :  { %916 = vperm.xlu0 %909, %v1042_v1   ;;  %799 = vmatpush3.bf16.msra.mxu0 %v928_v4  ;;  %v51_v22 = vld [vmem:[#allocation2 + $0x8] sm:$0xff]  ;;  %v81_v24 = vpack.c.bf16 %v76_v20, %v75_v19  ;;  %v1138_v29 = vld [vmem:[%s1319_s4] ss:$0 sm:$0xff]  ;;  %vm484_vm1 = vcmp.lt.s32.totalorder %v468_v23, %v1128_v27  ;;  %vm481_vm2 = vcmp.lt.s32.totalorder %v468_v23, %v1133_v28  ;;  %v77_v32 = vld [vmem:[#allocation2 + $0x11] sm:$0xff] }
  0x30   :  { %827 = vmatpush3.bf16.msra.mxu1 %v929_v5  ;;  %800 = vmatprep.subr.bf16.mxu0 %v1040_v0  ;;  %v56_v26 = vpack.c.bf16 %v51_v22, %v50_v21  ;;  %v515_v30 = vsel %vm484_vm1, 1, %v1042_v1  ;;  %vm497_vm3 = vcmp.lt.s32.totalorder %v468_v23, %v1138_v29  ;;  %v943_v31 = vld [vmem:[#allocation5 + $0x88] sm:$0xff]   ;;  %v512_v34 = vsel %vm481_vm2, 1, %v1042_v1  ;;  %v52_v36 = vld [vmem:[#allocation2 + $0x10] sm:$0xff]  ;;  %v53_v37 = vld [vmem:[#allocation2 + $0x18] sm:$0xff] }
  0x31   :  { %828 = vmatprep.subr.bf16.mxu1 %v1040_v0  ;;  %528 = vperm.xlu1 %920, %v515_v30   ;;  %v78_v33 = vld [vmem:[#allocation2 + $0x19] sm:$0xff]  ;;  %v1154_v35 = vld [vmem:[%s1319_s4 + $0x1] ss:$0 sm:$0xff]  ;;  %vm646_vm5 = vmxor %vm497_vm3, %vm1043_vm4  ;;  %v57_v40 = vpack.c.bf16 %v53_v37, %v52_v36  ;;  %vm485_vm12 = vcmp.lt.s32.totalorder %v469_v50, %v1128_v27  ;;  %vm482_vm13 = vcmp.lt.s32.totalorder %v469_v50, %v1133_v28 }
  0x32   :  { %vm570_vm6 = vmxor %vm481_vm2, %vm1043_vm4  ;;  %v82_v38 = vpack.c.bf16 %v78_v33, %v77_v32  ;;  %vm500_vm7 = vcmp.lt.s32.totalorder %v468_v23, %v1154_v35  ;;  %v944_v39 = vld [vmem:[#allocation5 + $0x90] sm:$0xff]   ;;  %v658_v42 = vsel %vm646_vm5, 1, %v1042_v1  ;;  %v945_v43 = vld [vmem:[#allocation5 + $0x98] sm:$0xff]   ;;  %vm501_vm14 = vcmp.lt.s32.totalorder %v469_v50, %v1154_v35 }
  0x33   :  { %801 = vmatpush3.bf16.msra.mxu0 %v930_v6  ;;  %519 = vperm.xlu0 %909, %v512_v34   ;;  %vm1172_vm8 = vmxor %vm484_vm1, %vm1043_vm4  ;;  %v79_v44 = vld [vmem:[#allocation2 + $0x21] sm:$0xff]  ;;  %v80_v45 = vld [vmem:[#allocation2 + $0x29] sm:$0xff]  ;;  %vm498_vm1 = vcmp.lt.s32.totalorder %v469_v50, %v1138_v29  ;;  %v516_v56 = vsel %vm485_vm12, 1, %v1042_v1  ;;  %v513_v57 = vsel %vm482_vm13, 1, %v1042_v1 }
  0x34   :  { %829 = vmatpush3.bf16.msra.mxu1 %v931_v7  ;;  %802 = vmatprep.subr.bf16.mxu0 %v1040_v0  ;;  %vm576_vm9 = vmand %vm570_vm6, %vm497_vm3  ;;  %v54_v47 = vld [vmem:[#allocation2 + $0x20] sm:$0xff]  ;;  %v55_v48 = vld [vmem:[#allocation2 + $0x28] sm:$0xff]  ;;  %v83_v51 = vpack.c.bf16 %v80_v45, %v79_v44 }
  0x35   :  { %830 = vmatprep.subr.bf16.mxu1 %v1040_v0  ;;  %922 = vperm.xlu1 %920, %v1042_v1   ;;  %vm649_vm10 = vmxor %vm500_vm7, %vm1043_vm4  ;;  %v588_v46 = vsel %vm576_vm9, 1, %v1042_v1  ;;  %v946_v52 = vld [vmem:[#allocation5 + $0xa0] sm:$0xff]   ;;  %v58_v53 = vpack.c.bf16 %v55_v48, %v54_v47  ;;  %v947_v55 = vld [vmem:[#allocation5 + $0xa8] sm:$0xff]  }
  0x36   :  { %v661_v49 = vsel %vm649_vm10, 1, %v1042_v1  ;;  %vm579_vm11 = vmand %vm1172_vm8, %vm500_vm7  ;;  %v948_v58 = vld [vmem:[#allocation5 + $0xb0] sm:$0xff]   ;;  %v949_v61 = vld [vmem:[#allocation5 + $0xb8] sm:$0xff]  }
  0x37   :  { %803 = vmatpush3.bf16.msra.mxu0 %v932_v8  ;;  %665 = vperm.xlu0 %909, %v658_v42   ;;  %v591_v54 = vsel %vm579_vm11, 1, %v1042_v1  ;;  %vm574_vm15 = vmxor %vm485_vm12, %vm1043_vm4  ;;  %v311_v62 = vld [vmem:[#allocation2 + $0x2] sm:$0xff]  ;;  %v312_v63 = vld [vmem:[#allocation2 + $0xa] sm:$0xff] }
  0x38   :  { %831 = vmatpush3.bf16.msra.mxu1 %v933_v9  ;;  %804 = vmatprep.subr.bf16.mxu0 %v1040_v0  ;;  %vm571_vm2 = vmxor %vm482_vm13, %vm1043_vm4  ;;  %v313_v3 = vld [vmem:[#allocation2 + $0x12] sm:$0xff]  ;;  %v314_v4 = vld [vmem:[#allocation2 + $0x1a] sm:$0xff]  ;;  %v317_v6 = vpack.c.bf16 %v312_v63, %v311_v62 }
  0x39   :  { %832 = vmatprep.subr.bf16.mxu1 %v1040_v0  ;;  %595 = vperm.xlu1 %920, %v588_v46   ;;  %vm580_vm3 = vmand %vm574_vm15, %vm501_vm14  ;;  %v318_v7 = vpack.c.bf16 %v314_v4, %v313_v3  ;;  %v315_v8 = vld [vmem:[#allocation2 + $0x22] sm:$0xff]  ;;  %v316_v9 = vld [vmem:[#allocation2 + $0x2a] sm:$0xff] }
  0x3a   :  { %vm577_vm5 = vmand %vm571_vm2, %vm498_vm1  ;;  %v592_v59 = vsel %vm580_vm3, 1, %v1042_v1 }
  0x3b   :  { %805 = vmatpush3.bf16.msra.mxu0 %v934_v10  ;;  %674 = vperm.xlu0 %909, %v661_v49   ;;  %v589_v60 = vsel %vm577_vm5, 1, %v1042_v1  ;;  %vm650_vm6 = vmxor %vm501_vm14, %vm1043_vm4  ;;  %v319_v10 = vpack.c.bf16 %v316_v9, %v315_v8  ;;  %v758_v49 = vld [vmem:[%s1317_s2] ss:$0 sm:$0xff]  ;;  %s1044_s2 = smov [#allocation7]  }
  0x3c   :  { %833 = vmatpush3.bf16.msra.mxu1 %v935_v11  ;;  %806 = vmatprep.subr.bf16.mxu0 %v1040_v0  ;;  %vm647_vm7 = vmxor %vm498_vm1, %vm1043_vm4  ;;  %v662_v2 = vsel %vm650_vm6, 1, %v1042_v1  ;;  %s721_s27 = sshll.u32 %s1044_s2, 4  ;;  %s722_s27 = int_to_ptr.vmem [resolvable:$true] %s721_s27 }
  0x3d   :  { %834 = vmatprep.subr.bf16.mxu1 %v1040_v0  ;;  %604 = vperm.xlu1 %920, %v591_v54   ;;  %v659_v5 = vsel %vm647_vm7, 1, %v1042_v1  ;;  %s1006_s28 = scalar_lea.vmem %s722_s27, 96  ;;  %p1011_p3 = scmp.lt.s32.totalorder %s722_s27, %s722_s27 }
  0x3e   :  { %p1007_p2 = scmp.ne.s32.totalorder %s722_s27, %s1006_s28  ;;  %p1012_p4 = scmp.lt.s32.totalorder %s1006_s28, %s1006_s28 }
  0x3f   :  { %807 = vmatpush3.bf16.msra.mxu0 %v936_v12  ;;  %531 = vperm.xlu0 %909, %v516_v56  }
  0x40   :  { %835 = vmatpush3.bf16.msra.mxu1 %v937_v13  ;;  %808 = vmatprep.subr.bf16.mxu0 %v1040_v0  ;;  %p1013_p5 = por %p1012_p4, %p1011_p3 }
  0x41   :  { %836 = vmatprep.subr.bf16.mxu1 %v1040_v0  ;;  %522 = vperm.xlu1 %920, %v513_v57  }
  0x42   :  { %p1014_p6 = pnand %p1013_p5, %p1007_p2 }
  0x43   :  { %809 = vmatpush3.bf16.msra.mxu0 %v938_v14  ;;  %607 = vperm.xlu0 %909, %v592_v59  }
  0x44   :  { %837 = vmatpush3.bf16.msra.mxu1 %v939_v15  ;;  %810 = vmatprep.subr.bf16.mxu0 %v1040_v0 }
  0x45   :  { %838 = vmatprep.subr.bf16.mxu1 %v1040_v0  ;;  %598 = vperm.xlu1 %920, %v589_v60  }
  0x47   :  { %811 = vmatpush3.bf16.msra.mxu0 %v940_v17  ;;  %677 = vperm.xlu0 %909, %v662_v2  }
  0x48   :  { %839 = vmatpush3.bf16.msra.mxu1 %v941_v18  ;;  %852 = vmatprep.subr.bf16.mxu0 %v1040_v0 }
  0x49   :  { %880 = vmatprep.subr.bf16.mxu1 %v1040_v0  ;;  %668 = vperm.xlu1 %920, %v659_v5  }
  0x4a   :  { %813 = vmatmul.mubr.bf16.vlgmr.msra.gmra.mrb[0].mxu0 %v81_v24 }
  0x4b   :  { %841 = vmatmul.mubr.bf16.vlgmr.msra.gmra.mrb[0].mxu1 %v56_v26  ;;  %853 = vmatpush3.bf16.msra.mxu0 %v942_v25 }
  0x4c   :  { %888 = vmatpush3.bf16.msra.mxu1 %v942_v25  ;;  %854 = vmatprep.subr.bf16.mxu0 %v1040_v0 }
  0x4d   :  { %881 = vmatprep.subr.bf16.mxu1 %v1040_v0  ;;  %844 = vmatprep.mubr.msk.bf16.mxu1 %vm1041_vm0, %v1040_v0 }
  0x4e   :  { %816 = vmatprep.mubr.msk.bf16.mxu0 %vm1041_vm0, %v1040_v0 }
  0x4f   :  { %855 = vmatpush3.bf16.msra.mxu0 %v943_v31 }
  0x50   :  { %889 = vmatpush3.bf16.msra.mxu1 %v943_v31  ;;  %856 = vmatprep.subr.bf16.mxu0 %v1040_v0 }
  0x51   :  { %882 = vmatprep.subr.bf16.mxu1 %v1040_v0 }
  0x52   :  { %817 = vmatmul.mubr.bf16.gmra.mrb[4].mxu0 %v82_v38 }
  0x53   :  { %857 = vmatpush3.bf16.msra.mxu0 %v944_v39  ;;  %845 = vmatmul.mubr.bf16.gmra.mrb[4].mxu1 %v57_v40 }
  0x54   :  { %890 = vmatpush3.bf16.msra.mxu1 %v944_v39  ;;  %858 = vmatprep.subr.bf16.mxu0 %v1040_v0 }
  0x55   :  { %883 = vmatprep.subr.bf16.mxu1 %v1040_v0  ;;  %848 = vmatprep.mubr.msk.bf16.mxu1 %vm1041_vm0, %v1040_v0 }
  0x56   :  { %820 = vmatprep.mubr.msk.bf16.mxu0 %vm1041_vm0, %v1040_v0 }
  0x57   :  { %859 = vmatpush3.bf16.msra.mxu0 %v945_v43 }
  0x58   :  { %891 = vmatpush3.bf16.msra.mxu1 %v945_v43  ;;  %860 = vmatprep.subr.bf16.mxu0 %v1040_v0 }
  0x59   :  { %884 = vmatprep.subr.bf16.mxu1 %v1040_v0 }
  0x5a   :  { %821 = vmatmul.mubr.bf16.gmra.mrb[8].mxu0 %v83_v51 }
  0x5b   :  { %861 = vmatpush3.bf16.msra.mxu0 %v946_v52  ;;  %849 = vmatmul.mubr.bf16.gmra.mrb[8].mxu1 %v58_v53 }
  0x5c   :  { %892 = vmatpush3.bf16.msra.mxu1 %v946_v52  ;;  %862 = vmatprep.subr.bf16.mxu0 %v1040_v0 }
  0x5d   :  { %885 = vmatprep.subr.bf16.mxu1 %v1040_v0  ;;  %868 = vmatprep.mubr.msk.bf16.mxu0 %vm1041_vm0, %v1040_v0 }
  0x5e   :  { %872 = vmatprep.mubr.msk.bf16.mxu1 %vm1041_vm0, %v1040_v0 }
  0x5f   :  { %863 = vmatpush3.bf16.msra.mxu0 %v947_v55 }
  0x60   :  { %893 = vmatpush3.bf16.msra.mxu1 %v947_v55  ;;  %864 = vmatprep.subr.bf16.mxu0 %v1040_v0 }
  0x61   :  { %886 = vmatprep.subr.bf16.mxu1 %v1040_v0 }
  0x63   :  { %865 = vmatpush3.bf16.msra.mxu0 %v948_v58 }
  0x64   :  { %894 = vmatpush3.bf16.msra.mxu1 %v948_v58  ;;  %866 = vmatprep.subr.bf16.mxu0 %v1040_v0 }
  0x65   :  { %887 = vmatprep.subr.bf16.mxu1 %v1040_v0 }
  0x67   :  { %867 = vmatpush3.bf16.msra.mxu0 %v949_v61 }
  0x68   :  { %895 = vmatpush3.bf16.msra.mxu1 %v949_v61 }
  0x6a   :  { %869 = vmatmul.mubr.bf16.vlgmr.msra.gmra.mrb[12].mxu0 %v317_v6 }
  0x6b   :  { %873 = vmatmul.mubr.bf16.vlgmr.msra.gmra.mrb[12].mxu1 %v318_v7 }
  0x6c   :  { %876 = vmatprep.mubr.msk.bf16.mxu1 %vm1041_vm0, %v1040_v0 }
  0x73   :  { %877 = vmatmul.mubr.bf16.gmra.mrb[16].mxu1 %v319_v10 }
  0xaa   :  { %v1234_v20 = vpop.permute.xlu0 %911 }
  0xab   :  { %v913_v4 = vunpack.i.l.bf16 %v1234_v20 }
  0xad   :  { %vm1252_vm0 = vcmp.eq.s32.totalorder %v913_v4, 1 }
  0xae   :  { %v1240_v32 = vpop.permute.xlu0 %916 }
  0xaf   :  { %v918_v5 = vunpack.i.l.bf16 %v1240_v32 }
  0xb0   :  { %v1236_v21 = vpop.permute.xlu1 %528 }
  0xb1   :  { %vm1256_vm4 = vcmp.eq.s32.totalorder %v918_v5, 1  ;;  %vm539_vm2 = vcmp.eq.s32.totalorder %v1236_v21, 1 }
  0xb2   :  { %v520_v44 = vpop.permute.xlu0 %519 }
  0xb3   :  { %vm536_vm8 = vcmp.eq.s32.totalorder %v520_v44, 1 }
  0xb4   :  { %v1238_v31 = vpop.permute.xlu1 %922 }
  0xb5   :  { %v924_v8 = vunpack.i.l.bf16 %v1238_v31 }
  0xb6   :  { %v666_v46 = vpop.permute.xlu0 %665 }
  0xb7   :  { %vm1262_vm9 = vcmp.eq.s32.totalorder %v924_v8, 1  ;;  %vm682_vm10 = vcmp.eq.s32.totalorder %v666_v46, 1 }
  0xb8   :  { %v596_v41 = vpop.permute.xlu1 %595 }
  0xb9   :  { %vm612_vm11 = vcmp.eq.s32.totalorder %v596_v41, 1 }
  0xba   :  { %v1247_v2 = vpop.permute.xlu0 %674 }
  0xbb   :  { %vm685_vm5 = vcmp.eq.s32.totalorder %v1247_v2, 1 }
  0xbc   :  { %v1242_v45 = vpop.permute.xlu1 %604 }
  0xbd   :  { %vm615_vm6 = vcmp.eq.s32.totalorder %v1242_v45, 1 }
  0xc0   :  { %v523_v47 = vpop.permute.xlu1 %522 }
  0xc1   :  { %vm537_vm12 = vcmp.eq.s32.totalorder %v523_v47, 1 }
  0xc4   :  { %v599_v3 = vpop.permute.xlu1 %598 }
  0xc5   :  { %vm613_vm13 = vcmp.eq.s32.totalorder %v599_v3, 1 }
 0x11d   :  { %v183_v11 = vpop.f32.mrb[0].mxu0 }
 0x11e   :  { %v288_v12 = vpop.f32.mrb[0].mxu1  ;;  %v814_v1 = vpop.f32.mrb[1].mxu0 }
 0x11f   :  { %v289_v13 = vadd.f32 %v288_v12, %v183_v11  ;;  %v842_v14 = vpop.f32.mrb[1].mxu1  ;;  %v186_v15 = vpop.f32.mrb[2].mxu0 }
 0x120   :  { %v291_v16 = vpop.f32.mrb[2].mxu1  ;;  %v815_v17 = vpop.f32.mrb[3].mxu0 }
 0x121   :  { %v292_v18 = vadd.f32 %v291_v16, %v186_v15  ;;  %v843_v19 = vpop.f32.mrb[3].mxu1  ;;  %v1260_v16 = vpop.permute.xlu0 %531 }
 0x122   :  { %v669_v17 = vpop.permute.xlu1 %668  ;;  %vm540_vm7 = vcmp.eq.s32.totalorder %v1260_v16, 1 }
 0x123   :  { %vm683_vm14 = vcmp.eq.s32.totalorder %v669_v17, 1 }
 0x125   :  { %v191_v22 = vpop.f32.mrb[4].mxu0 }
 0x126   :  { %v296_v0 = vpop.f32.mrb[4].mxu1  ;;  %v818_v23 = vpop.f32.mrb[5].mxu0 }
 0x127   :  { %v297_v24 = vadd.f32 %v296_v0, %v191_v22  ;;  %v846_v25 = vpop.f32.mrb[5].mxu1  ;;  %v194_v26 = vpop.f32.mrb[6].mxu0 }
 0x128   :  { %v299_v27 = vpop.f32.mrb[6].mxu1  ;;  %v819_v28 = vpop.f32.mrb[7].mxu0 }
 0x129   :  { %v300_v29 = vadd.f32 %v299_v27, %v194_v26  ;;  %v847_v30 = vpop.f32.mrb[7].mxu1 }
 0x12d   :  { %v199_v33 = vpop.f32.mrb[8].mxu0 }
 0x12e   :  { %v304_v34 = vpop.f32.mrb[8].mxu1  ;;  %v822_v35 = vpop.f32.mrb[9].mxu0 }
 0x12f   :  { %v305_v36 = vadd.f32 %v304_v34, %v199_v33  ;;  %v850_v37 = vpop.f32.mrb[9].mxu1  ;;  %v202_v38 = vpop.f32.mrb[10].mxu0 }
 0x130   :  { %v307_v39 = vpop.f32.mrb[10].mxu1  ;;  %v823_v40 = vpop.f32.mrb[11].mxu0  ;;  %v919_v37 = vunpack.i.h.bf16 %v1240_v32 }
 0x131   :  { %v308_v42 = vadd.f32 %v307_v39, %v202_v38  ;;  %v851_v43 = vpop.f32.mrb[11].mxu1  ;;  %v608_v38 = vpop.permute.xlu0 %607  ;;  %v925_v40 = vunpack.i.h.bf16 %v1238_v31 }
 0x132   :  { %vm1280_vm1 = vcmp.eq.s32.totalorder %v919_v37, 1 }
 0x133   :  { %vm1285_vm3 = vcmp.eq.s32.totalorder %v925_v40, 1 }
 0x13d   :  { %v419_v48 = vpop.f32.mrb[12].mxu0 }
 0x13e   :  { %v442_v50 = vadd.f32 %v419_v48, %v289_v13  ;;  %v427_v51 = vpop.f32.mrb[12].mxu1  ;;  %v870_v52 = vpop.f32.mrb[13].mxu0 }
 0x13f   :  { %v444_v53 = vadd.f32 %v427_v51, %v297_v24  ;;  %v874_v54 = vpop.f32.mrb[13].mxu1  ;;  %v422_v55 = vpop.f32.mrb[14].mxu0 }
 0x140   :  { %v455_v56 = vadd.f32 %v758_v49, %v442_v50  ;;  %v443_v57 = vadd.f32 %v422_v55, %v292_v18  ;;  %v430_v58 = vpop.f32.mrb[14].mxu1  ;;  %v871_v59 = vpop.f32.mrb[15].mxu0 }
 0x141   :  { %v457_v60 = vadd.f32 %v758_v49, %v444_v53  ;;  %v445_v61 = vadd.f32 %v430_v58, %v300_v29  ;;  %v875_v62 = vpop.f32.mrb[15].mxu1  ;;  %v678_v51 = vpop.permute.xlu0 %677 }
 0x142   :  { %950 = vtanh.f32 %v455_v56  ;;  %v456_v63 = vadd.f32 %v758_v49, %v443_v57 }
 0x143   :  { %952 = vtanh.f32 %v457_v60  ;;  %v458_v6 = vadd.f32 %v758_v49, %v445_v61 }
 0x144   :  { %954 = vtanh.f32 %v456_v63 }
 0x145   :  { %956 = vtanh.f32 %v458_v6 }
 0x146   :  { %v435_v7 = vpop.f32.mrb[16].mxu1 }
 0x147   :  { %v446_v9 = vadd.f32 %v435_v7, %v305_v36  ;;  %v878_v10 = vpop.f32.mrb[17].mxu1  ;;  %v914_v36 = vunpack.i.h.bf16 %v1234_v20 }
 0x148   :  { %v438_v11 = vpop.f32.mrb[18].mxu1 }
 0x149   :  { %v459_v12 = vadd.f32 %v758_v49, %v446_v9  ;;  %v447_v1 = vadd.f32 %v438_v11, %v308_v42  ;;  %v879_v13 = vpop.f32.mrb[19].mxu1  ;;  %vm1276_vm15 = vcmp.eq.s32.totalorder %v914_v36, 1 }
 0x14b   :  { %v460_v19 = vadd.f32 %v758_v49, %v447_v1  ;;  %958 = vtanh.f32 %v459_v12 }
 0x14c   :  { %v951_v22 = vpop.eup %950 }
 0x14d   :  { %v953_v0 = vpop.eup %952  ;;  %960 = vtanh.f32 %v460_v19  ;;  %v542_v23 = vsel %vm536_vm8, %v951_v22, -inf  ;;  %v618_v24 = vsel %vm612_vm11, %v951_v22, -inf  ;;  %v688_v28 = vsel %vm682_vm10, %v951_v22, -inf }
 0x14e   :  { %v955_v25 = vpop.eup %954  ;;  %v544_v26 = vsel %vm1252_vm0, %v953_v0, -inf  ;;  %v620_v27 = vsel %vm1256_vm4, %v953_v0, -inf  ;;  %v690_v29 = vsel %vm1262_vm9, %v953_v0, -inf  ;;  %vm616_vm0 = vcmp.eq.s32.totalorder %v608_v38, 1 }
 0x14f   :  { %v543_v30 = vsel %vm537_vm12, %v955_v25, -inf  ;;  %v548_v33 = vmax.f32 %v542_v23, %v544_v26  ;;  %v619_v34 = vsel %vm613_vm13, %v955_v25, -inf  ;;  %v624_v35 = vmax.f32 %v618_v24, %v620_v27  ;;  %v957_v48 = vpop.eup %956 }
 0x150   :  { %v689_v39 = vsel %vm683_vm14, %v955_v25, -inf  ;;  %v694_v43 = vmax.f32 %v688_v28, %v690_v29  ;;  %v545_v53 = vsel %vm539_vm2, %v957_v48, -inf  ;;  %v621_v55 = vsel %vm615_vm6, %v957_v48, -inf }
 0x151   :  { %v549_v41 = vmax.f32 %v548_v33, %v543_v30  ;;  %v625_v42 = vmax.f32 %v624_v35, %v619_v34  ;;  %vm686_vm4 = vcmp.eq.s32.totalorder %v678_v51, 1  ;;  %v691_v61 = vsel %vm685_vm5, %v957_v48, -inf }
 0x152   :  { %v695_v47 = vmax.f32 %v694_v43, %v689_v39  ;;  %vm566_vm8 = vcmask 1041409  }
 0x153   :  { %v550_v44 = vrot.slane %v549_v41, 4  ;;  %v626_v46 = vrot.slane %v625_v42, 4 }
 0x154   :  { %v696_v31 = vrot.slane %v695_v47, 4 }
 0x155   :  { %v959_v50 = vpop.eup %958  ;;  %v551_v54 = vmax.f32 %v549_v41, %v550_v44  ;;  %v627_v56 = vmax.f32 %v625_v42, %v626_v46 }
 0x156   :  { %v697_v59 = vmax.f32 %v695_v47, %v696_v31  ;;  %v546_v62 = vsel %vm540_vm7, %v959_v50, -inf  ;;  %v622_v63 = vsel %vm616_vm0, %v959_v50, -inf  ;;  %v692_v3 = vsel %vm686_vm4, %v959_v50, -inf }
 0x157   :  { %v961_v52 = vpop.eup %960  ;;  %v552_v5 = vrot.slane %v551_v54, 2  ;;  %v628_v7 = vrot.slane %v627_v56, 2 }
 0x158   :  { %v547_v21 = vsel %vm1276_vm15, %v961_v52, -inf  ;;  %v623_v57 = vsel %vm1280_vm1, %v961_v52, -inf  ;;  %v693_v58 = vsel %vm1285_vm3, %v961_v52, -inf  ;;  %v698_v9 = vrot.slane %v697_v59, 2 }
 0x159   :  { %v556_v45 = vmax.f32 %v545_v53, %v547_v21  ;;  %v632_v60 = vmax.f32 %v621_v55, %v623_v57  ;;  %v702_v4 = vmax.f32 %v691_v61, %v693_v58  ;;  %v553_v13 = vmax.f32 %v551_v54, %v552_v5 }
 0x15a   :  { %v629_v2 = vmax.f32 %v627_v56, %v628_v7  ;;  %v699_v17 = vmax.f32 %v697_v59, %v698_v9 }
 0x15b   :  { %v557_v6 = vmax.f32 %v556_v45, %v546_v62  ;;  %v633_v8 = vmax.f32 %v632_v60, %v622_v63  ;;  %v703_v10 = vmax.f32 %v702_v4, %v692_v3  ;;  %v554_v0 = vrot.slane %v553_v13, 1 }
 0x15c   :  { %v630_v24 = vrot.slane %v629_v2, 1  ;;  %v700_v26 = vrot.slane %v699_v17, 1 }
 0x15d   :  { %v558_v11 = vrot.slane %v557_v6, 4  ;;  %v634_v12 = vrot.slane %v633_v8, 4  ;;  %v704_v1 = vrot.slane %v703_v10, 4  ;;  %v555_v33 = vmax.f32 %v553_v13, %v554_v0 }
 0x15e   :  { %v631_v35 = vmax.f32 %v629_v2, %v630_v24  ;;  %v701_v37 = vmax.f32 %v699_v17, %v700_v26 }
 0x15f   :  { %v559_v14 = vmax.f32 %v557_v6, %v558_v11  ;;  %v635_v15 = vmax.f32 %v633_v8, %v634_v12  ;;  %v705_v16 = vmax.f32 %v703_v10, %v704_v1 }
 0x161   :  { %v560_v18 = vrot.slane %v559_v14, 2  ;;  %v636_v19 = vrot.slane %v635_v15, 2  ;;  %v706_v22 = vrot.slane %v705_v16, 2 }
 0x163   :  { %v561_v23 = vmax.f32 %v559_v14, %v560_v18  ;;  %v637_v25 = vmax.f32 %v635_v15, %v636_v19  ;;  %v707_v27 = vmax.f32 %v705_v16, %v706_v22 }
 0x165   :  { %v562_v28 = vrot.slane %v561_v23, 1  ;;  %v638_v29 = vrot.slane %v637_v25, 1  ;;  %v708_v30 = vrot.slane %v707_v27, 1 }
 0x167   :  { %v563_v34 = vmax.f32 %v561_v23, %v562_v28  ;;  %v639_v36 = vmax.f32 %v637_v25, %v638_v29  ;;  %v709_v38 = vmax.f32 %v707_v27, %v708_v30 }
 0x169   :  { %v567_v39 = vsel %vm566_vm8, %v563_v34, %v555_v33  ;;  %v642_v40 = vsel %vm566_vm8, %v639_v36, %v631_v35  ;;  %v712_v41 = vsel %vm566_vm8, %v709_v38, %v701_v37 }
 0x16a   :  { %569 = vst [vmem:[#allocation7] sm:$0x3] %v567_v39  ;;  %645 = vst [vmem:[#allocation7 + $0x2] sm:$0x3] %v642_v40 }
 0x16b   :  { %715 = vst [vmem:[#allocation7 + $0x4] sm:$0x3] %v712_v41 }
 0x16c   :  { %1017 = shalt.err (!%p1014_p6)
}
 0x16d   :  { %s1018_s6 = scalar_lea.hbm %s1320_s5, 96 }
 0x16e   :  { %p1019_p7 = scmp.ne.s32.totalorder %s1320_s5, %s1018_s6  ;;  %p1022_p8 = scmp.lt.u32.totalorder %s1018_s6, %s1320_s5 }
 0x170   :  { %p1024_p9 = pnand %p1022_p8, %p1019_p7 }
 0x172   :  { %1027 = shalt.err (!%p1024_p9)
}
 0x173   :  { %s1045_s11 = smov 32   ;;  %s1046_s12 = smov 2  }
 0x174   :  { %727 = dma.vmem_to_hbm [thread:$0]  %s722_s27, 96, %s1320_s5, [#allocation4], %s1045_s11, %s1045_s11, %s1046_s12  }
 0x175   :  { %1032 = dma.done.wait [#allocation4], 96  }
 0x176   :  { %1033 = vsyncadd [#allocation4], 4294967200 }
 0x177   :  { %731 = vsyncpa [#allocation3], 1 }
 0x178   :  { %732 = vsyncpa [#allocation6], 1 }
 0x179   :  { %733 = vsyncpa [#allocation4], 1 }

</bundles_post_ra>
